<compile_context>
chip_gen: v7x
topology: tpu7x:2x2x1
jax: 0.10.0
libtpu: 0.0.40
codegen_flags: <defaults>
</compile_context>

<pallas_src>
import jax
import jax.numpy as jnp
from jax import lax
from jax.experimental import pallas as pl
from jax.experimental.pallas import tpu as pltpu

EPS = 1e-5  # nn.LayerNorm default


def _round_up(x, m):
    return (x + m - 1) // m * m


def _round_down(x, m):
    return max(m, x // m * m)


def prenorm_kernel(x_ref, g_ref, b_ref, w_ref, wb_ref, o_ref, y_ref):
    # x_ref: (tm, D) token tile; g/b: (1, D); w_ref: (D, tn) weight tile;
    # wb_ref: (1, tn); o_ref: (tm, tn); y_ref: (tm, D) VMEM scratch holding
    # the normalized activations for the current token tile.

    @pl.when(pl.program_id(1) == 0)
    def _():
        # LayerNorm statistics in f32 (biased variance, like nn.LayerNorm),
        # computed once per token tile and cached in the MXU feed dtype.
        x = x_ref[...].astype(jnp.float32)
        mean = jnp.mean(x, axis=-1, keepdims=True)
        xc = x - mean
        var = jnp.mean(xc * xc, axis=-1, keepdims=True)
        y = xc * lax.rsqrt(var + EPS)
        y = y * g_ref[...].astype(jnp.float32) + b_ref[...].astype(jnp.float32)
        y_ref[...] = y.astype(y_ref.dtype)

    # fn: Linear(D -> tn tile) on the MXU, f32 accumulation.
    out = jnp.dot(y_ref[...], w_ref[...], preferred_element_type=jnp.float32)
    out = out + wb_ref[...].astype(jnp.float32)
    o_ref[...] = out.astype(o_ref.dtype)


def prenorm(x, gamma, beta, w, wb, *, tm=256, tn=None, mxu_dtype=None,
            vmem_limit_bytes=None):
    """x: (B, N, D) -> (B, N, H).  LayerNorm(D) then Linear(D, H).

    tm: requested token-tile rows (capped so (tm, D) f32 temporaries stay
        ~2 MiB; rounded to the sublane granularity of x.dtype).
    tn: hidden-tile width.  None -> auto: whole H if the weight fits the VMEM
        budget, otherwise a multiple of 256.
    mxu_dtype: dtype fed to the MXU (default: the weight's dtype).
    """
    B, N, D = x.shape
    H = w.shape[1]
    M = B * N
    out_dtype = x.dtype
    mxu_dtype = jnp.dtype(mxu_dtype) if mxu_dtype is not None else jnp.dtype(w.dtype)

    x_bytes = jnp.dtype(x.dtype).itemsize
    w_bytes = mxu_dtype.itemsize

    # VMEM budget: 3/4 of physical per-TC VMEM (leaves headroom for Mosaic
    # internal scratch/semaphores), capped at 100 MiB.
    #   v7x (64 MiB/TC) -> ~48 MiB;  v5e/v6e (128 MiB) -> ~96-100 MiB.
    if vmem_limit_bytes is None:
        try:
            cap = int(pltpu.get_tpu_info().vmem_capacity_bytes)
        except Exception:
            cap = 64 * 1024 * 1024  # conservative (v7x-sized) fallback
        vmem_limit_bytes = min(cap * 3 // 4, 100 * 1024 * 1024)

    # --- Token tile: bound the f32 LayerNorm working set (~2 MiB per temp). ---
    sub = 8 if x_bytes >= 4 else 16
    tm_cap = _round_down((2 * 1024 * 1024) // (4 * D), sub)
    tm = max(sub, min(_round_up(tm, sub), tm_cap))
    if tm >= M:
        tm = M  # single, full-extent token tile (full-dim blocks are always legal)

    # --- Hidden tile: lane-dense; hold the whole weight resident if it fits. ---
    Hp = _round_up(H, 128)
    w_budget = vmem_limit_bytes // 3
    if tn is None:
        if 2 * D * Hp * w_bytes <= w_budget:
            tn = H  # single H tile: weight stays resident, no H re-streaming
        else:
            tn = max(256, _round_down(w_budget // (2 * D * w_bytes), 256))
            tn = min(tn, Hp)
            if tn >= Hp:
                tn = H
    else:
        tn = max(128, min(_round_up(tn, 128), Hp))
        if tn >= Hp:
            tn = H

    grid = (pl.cdiv(M, tm), pl.cdiv(H, tn))

    x2 = x.reshape(M, D)                       # free reshape, no HBM copy
    wp = w if jnp.dtype(w.dtype) == mxu_dtype else w.astype(mxu_dtype)

    out = pl.pallas_call(
        prenorm_kernel,
        out_shape=jax.ShapeDtypeStruct((M, H), out_dtype),
        grid_spec=pltpu.PrefetchScalarGridSpec(
            num_scalar_prefetch=0,
            grid=grid,
            in_specs=[
                # x: index invariant along the inner H axis -> DMA'd once / M tile.
                pl.BlockSpec((tm, D), lambda i, j: (i, 0)),
                pl.BlockSpec((1, D), lambda i, j: (0, 0)),    # gamma
                pl.BlockSpec((1, D), lambda i, j: (0, 0)),    # beta
                pl.BlockSpec((D, tn), lambda i, j: (0, j)),   # fn weight tile
                pl.BlockSpec((1, tn), lambda i, j: (0, j)),   # fn bias tile
            ],
            out_specs=pl.BlockSpec((tm, tn), lambda i, j: (i, j)),
            # Normalized-activation cache, carried across the inner H axis.
            scratch_shapes=[pltpu.VMEM((tm, D), mxu_dtype)],
        ),
        compiler_params=pltpu.CompilerParams(
            # M is independent -> megacore-shardable on v7x; the H axis carries
            # scratch state, so it must stay "arbitrary".
            dimension_semantics=("parallel", "arbitrary"),
            vmem_limit_bytes=vmem_limit_bytes),
    )(x2, gamma, beta, wp, wb)

    return out.reshape(B, N, H)


def prenorm_reference(x, gamma, beta, w, wb):
    xf = x.astype(jnp.float32)
    mean = jnp.mean(xf, axis=-1, keepdims=True)
    var = jnp.mean((xf - mean) ** 2, axis=-1, keepdims=True)
    y = (xf - mean) * jax.lax.rsqrt(var + EPS) * gamma.astype(jnp.float32)[0] \
        + beta.astype(jnp.float32)[0]
    out = jnp.dot(y, w.astype(jnp.float32),
                  precision=jax.lax.Precision.HIGHEST)
    return out + wb.astype(jnp.float32)[0]


if __name__ == "__main__":
    key = jax.random.PRNGKey(0)
    k1, k2, k3, k4 = jax.random.split(key, 4)

    # --- Case 1: f32, lane-aligned shapes, single tile on both axes ---
    B, N, D, H = 2, 8, 128, 128
    x = jax.random.normal(k1, (B, N, D), dtype=jnp.float32)
    gamma = 1.0 + 0.1 * jax.random.normal(k2, (1, D), dtype=jnp.float32)
    beta = 0.1 * jax.random.normal(k3, (1, D), dtype=jnp.float32)
    w = 0.02 * jax.random.normal(k4, (D, H), dtype=jnp.float32)
    wb = 0.01 * jnp.ones((1, H), dtype=jnp.float32)

    out = prenorm(x, gamma, beta, w, wb)
    jax.block_until_ready(out)
    ref = prenorm_reference(x, gamma, beta, w, wb)
    assert out.shape == (B, N, H)
    assert jnp.allclose(out.astype(jnp.float32), ref, atol=5e-3, rtol=5e-3)

    # --- Case 2: bf16 operands, ragged M and H (full-dim blocks, native bf16
    # MXU path, no wrapper-side padding) ---
    B2, N2, D2, H2 = 2, 9, 64, 96
    x2 = jax.random.normal(k1, (B2, N2, D2), dtype=jnp.float32).astype(jnp.bfloat16)
    g2 = (1.0 + 0.1 * jax.random.normal(k2, (1, D2), jnp.float32)).astype(jnp.bfloat16)
    b2 = (0.1 * jax.random.normal(k3, (1, D2), jnp.float32)).astype(jnp.bfloat16)
    w2 = (0.02 * jax.random.normal(k4, (D2, H2), jnp.float32)).astype(jnp.bfloat16)
    wb2 = jnp.zeros((1, H2), dtype=jnp.bfloat16)

    out2 = prenorm(x2, g2, b2, w2, wb2)
    jax.block_until_ready(out2)
    ref2 = prenorm_reference(x2, g2, b2, w2, wb2)
    assert out2.shape == (B2, N2, H2)
    assert jnp.allclose(out2.astype(jnp.float32), ref2, atol=3e-2, rtol=3e-2)

    # --- Case 3: multi-tile grid (M tiles x H tiles) with a ragged M edge ---
    # exercises the scratch-cached LayerNorm reuse across H tiles and the
    # masked final M block.
    B3, N3, D3, H3 = 2, 50, 128, 384
    x3 = jax.random.normal(k1, (B3, N3, D3), dtype=jnp.float32)
    g3 = 1.0 + 0.1 * jax.random.normal(k2, (1, D3), dtype=jnp.float32)
    b3 = 0.1 * jax.random.normal(k3, (1, D3), dtype=jnp.float32)
    w3 = 0.02 * jax.random.normal(k4, (D3, H3), dtype=jnp.float32)
    wb3 = 0.01 * jnp.ones((1, H3), dtype=jnp.float32)

    out3 = prenorm(x3, g3, b3, w3, wb3, tm=32, tn=128)
    jax.block_until_ready(out3)
    ref3 = prenorm_reference(x3, g3, b3, w3, wb3)
    assert out3.shape == (B3, N3, H3)
    assert jnp.allclose(out3.astype(jnp.float32), ref3, atol=5e-3, rtol=5e-3)

    print("KERNEL_OK")
</pallas_src>

<mosaic_0001>
module attributes {stable_mosaic.version = 11 : i64} {
  func.func @prenorm_kernel(%arg0: i32, %arg1: i32, %arg2: memref<16x128xf32, #tpu.memory_space<vmem>>, %arg3: memref<1x128xf32, #tpu.memory_space<vmem>>, %arg4: memref<1x128xf32, #tpu.memory_space<vmem>>, %arg5: memref<128x128xf32, #tpu.memory_space<vmem>>, %arg6: memref<1x128xf32, #tpu.memory_space<vmem>>, %arg7: memref<16x128xf32, #tpu.memory_space<vmem>>, %arg8: memref<16x128xf32, #tpu.memory_space<vmem>>) attributes {dimension_semantics = [#tpu.dimension_semantics<parallel>, #tpu.dimension_semantics<arbitrary>], iteration_bounds = array<i64: 1, 1>, scalar_prefetch = 0 : i64, scratch_operands = 1 : i64, tpu.core_type = #tpu.core_type<tc>, window_params = [{transform_indices = @transform_0, window_bounds = array<i64: 16, 128>}, {pipeline_mode = #tpu.pipeline_mode<synchronous>, transform_indices = @transform_1, window_bounds = array<i64: 1, 128>}, {pipeline_mode = #tpu.pipeline_mode<synchronous>, transform_indices = @transform_2, window_bounds = array<i64: 1, 128>}, {transform_indices = @transform_3, window_bounds = array<i64: 128, 128>}, {transform_indices = @transform_4, window_bounds = array<i64: 1, 128>}, {transform_indices = @transform_5, window_bounds = array<i64: 16, 128>}]} {
    %c0_i32 = arith.constant 0 : i32
    %0 = arith.cmpi eq, %arg1, %c0_i32 : i32
    %1 = arith.extui %0 : i1 to i32
    %c0_i32_0 = arith.constant 0 : i32
    %2 = arith.cmpi ne, %1, %c0_i32_0 : i32
    scf.if %2 {
      %c0_8 = arith.constant 0 : index
      %c0_9 = arith.constant 0 : index
      %10 = vector.load %arg2[%c0_8, %c0_9] : memref<16x128xf32, #tpu.memory_space<vmem>>, vector<16x128xf32>
      %cst_10 = arith.constant dense<0.000000e+00> : vector<16xf32>
      %11 = vector.multi_reduction <add>, %10, %cst_10 [1] : vector<16x128xf32> to vector<16xf32>
      %12 = vector.shape_cast %11 : vector<16xf32> to vector<16x1xf32>
      %cst_11 = arith.constant 1.280000e+02 : f32
      %13 = vector.broadcast %cst_11 : f32 to vector<16x1xf32>
      %14 = arith.divf %12, %13 : vector<16x1xf32>
      %15 = vector.broadcast %14 : vector<16x1xf32> to vector<16x128xf32>
      %16 = arith.subf %10, %15 : vector<16x128xf32>
      %17 = arith.mulf %16, %16 : vector<16x128xf32>
      %cst_12 = arith.constant dense<0.000000e+00> : vector<16xf32>
      %18 = vector.multi_reduction <add>, %17, %cst_12 [1] : vector<16x128xf32> to vector<16xf32>
      %19 = vector.shape_cast %18 : vector<16xf32> to vector<16x1xf32>
      %cst_13 = arith.constant 1.280000e+02 : f32
      %20 = vector.broadcast %cst_13 : f32 to vector<16x1xf32>
      %21 = arith.divf %19, %20 : vector<16x1xf32>
      %cst_14 = arith.constant 9.99999974E-6 : f32
      %22 = vector.broadcast %cst_14 : f32 to vector<16x1xf32>
      %23 = arith.addf %21, %22 : vector<16x1xf32>
      %24 = math.rsqrt %23 : vector<16x1xf32>
      %25 = vector.broadcast %24 : vector<16x1xf32> to vector<16x128xf32>
      %26 = arith.mulf %16, %25 : vector<16x128xf32>
      %c0_15 = arith.constant 0 : index
      %c0_16 = arith.constant 0 : index
      %27 = vector.load %arg3[%c0_15, %c0_16] : memref<1x128xf32, #tpu.memory_space<vmem>>, vector<1x128xf32>
      %28 = vector.broadcast %27 : vector<1x128xf32> to vector<16x128xf32>
      %29 = arith.mulf %26, %28 : vector<16x128xf32>
      %c0_17 = arith.constant 0 : index
      %c0_18 = arith.constant 0 : index
      %30 = vector.load %arg4[%c0_17, %c0_18] : memref<1x128xf32, #tpu.memory_space<vmem>>, vector<1x128xf32>
      %31 = vector.broadcast %30 : vector<1x128xf32> to vector<16x128xf32>
      %32 = arith.addf %29, %31 : vector<16x128xf32>
      %c0_19 = arith.constant 0 : index
      %c0_20 = arith.constant 0 : index
      %33 = vector.load %arg8[%c0_19, %c0_20] : memref<16x128xf32, #tpu.memory_space<vmem>>, vector<16x128xf32>
      tpu.vector_store %arg8[%c0_19, %c0_20], %32 {strides = array<i32>} : memref<16x128xf32, #tpu.memory_space<vmem>>, vector<16x128xf32>,
    } else {
    }
    %c0 = arith.constant 0 : index
    %c0_1 = arith.constant 0 : index
    %3 = vector.load %arg8[%c0, %c0_1] : memref<16x128xf32, #tpu.memory_space<vmem>>, vector<16x128xf32>
    %c0_2 = arith.constant 0 : index
    %c0_3 = arith.constant 0 : index
    %4 = vector.load %arg5[%c0_2, %c0_3] : memref<128x128xf32, #tpu.memory_space<vmem>>, vector<128x128xf32>
    %cst = arith.constant dense<0.000000e+00> : vector<16x128xf32>
    %5 = tpu.matmul %3, %4, %cst {dimension_numbers = #tpu.dot_dimension_numbers<[1], [0], [0], [1], [0, 0, 1, 1], [], []>} : vector<16x128xf32>, vector<128x128xf32>, vector<16x128xf32> -> vector<16x128xf32>
    %c0_4 = arith.constant 0 : index
    %c0_5 = arith.constant 0 : index
    %6 = vector.load %arg6[%c0_4, %c0_5] : memref<1x128xf32, #tpu.memory_space<vmem>>, vector<1x128xf32>
    %7 = vector.broadcast %6 : vector<1x128xf32> to vector<16x128xf32>
    %8 = arith.addf %5, %7 : vector<16x128xf32>
    %c0_6 = arith.constant 0 : index
    %c0_7 = arith.constant 0 : index
    %9 = vector.load %arg7[%c0_6, %c0_7] : memref<16x128xf32, #tpu.memory_space<vmem>>, vector<16x128xf32>
    tpu.vector_store %arg7[%c0_6, %c0_7], %8 {strides = array<i32>} : memref<16x128xf32, #tpu.memory_space<vmem>>, vector<16x128xf32>,
    return
  }
  func.func @transform_0(%arg0: i32, %arg1: i32) -> (i32, i32) {
    %c0_i32 = arith.constant 0 : i32
    %c0_i32_0 = arith.constant 0 : i32
    return %arg0, %c0_i32 : i32, i32
  }
  func.func @transform_1(%arg0: i32, %arg1: i32) -> (i32, i32) {
    %c0_i32 = arith.constant 0 : i32
    %c0_i32_0 = arith.constant 0 : i32
    %c0_i32_1 = arith.constant 0 : i32
    return %c0_i32, %c0_i32_0 : i32, i32
  }
  func.func @transform_2(%arg0: i32, %arg1: i32) -> (i32, i32) {
    %c0_i32 = arith.constant 0 : i32
    %c0_i32_0 = arith.constant 0 : i32
    %c0_i32_1 = arith.constant 0 : i32
    return %c0_i32, %c0_i32_0 : i32, i32
  }
  func.func @transform_3(%arg0: i32, %arg1: i32) -> (i32, i32) {
    %c0_i32 = arith.constant 0 : i32
    %c0_i32_0 = arith.constant 0 : i32
    return %c0_i32, %arg1 : i32, i32
  }
  func.func @transform_4(%arg0: i32, %arg1: i32) -> (i32, i32) {
    %c0_i32 = arith.constant 0 : i32
    %c0_i32_0 = arith.constant 0 : i32
    return %c0_i32, %arg1 : i32, i32
  }
  func.func @transform_5(%arg0: i32, %arg1: i32) -> (i32, i32) {
    %c0_i32 = arith.constant 0 : i32
    return %arg0, %arg1 : i32, i32
  }
}

</mosaic_0001>

<bundles_post_ra>
// kernel: tpu_custom_call.1
= control target key start
LH: loop header
LB: loop body
LE: loop exit
PB: predicated region body
PF: predicated region fallthrough
CT: control target
= control target key end

     0   :  { %10 = vsyncpa [#allocation4], 0  ;;  %s476_s0 = inlined_call_operand.hbm [shape: f32[16,128], index: 0, kind: input, shape index: {}]   ;;  %s477_s1 = inlined_call_operand.vmem [shape: f32[1,128], index: 1, kind: input, shape index: {}]   ;;  %s478_s2 = inlined_call_operand.vmem [shape: f32[1,128], index: 2, kind: input, shape index: {}]   ;;  %s479_s3 = inlined_call_operand.hbm [shape: f32[128,128], index: 3, kind: input, shape index: {}]   ;;  %s480_s4 = inlined_call_operand.vmem [shape: f32[1,128], index: 4, kind: input, shape index: {}]   ;;  %s481_s5 = inlined_call_operand.hbm [shape: f32[16,128], index: 5, kind: output, shape index: {}]  }
   0x1   :  { %11 = vsyncpa [#allocation7], 0 }
   0x2   :  { %12 = vsyncpa [#allocation5], 0  ;;  %s387_s18 = smov [#allocation3]   ;;  %s315_s22 = scalar_lea.hbm %s476_s0, 256 }
   0x3   :  { %s18_s19 = sshll.u32 %s387_s18, 4  ;;  %p316_p0 = scmp.ne.s32.totalorder %s476_s0, %s315_s22  ;;  %s19_s19 = int_to_ptr.vmem [resolvable:$true] %s18_s19 }
   0x4   :  { %p319_p1 = scmp.lt.u32.totalorder %s315_s22, %s476_s0 }
   0x6   :  { %p321_p2 = pnand %p319_p1, %p316_p0 }
   0x8   :  { %324 = shalt.err (!%p321_p2)
}
   0x9   :  { %s325_s27 = scalar_lea.vmem %s19_s19, 256  ;;  %p330_p4 = scmp.lt.s32.totalorder %s19_s19, %s19_s19 }
   0xa   :  { %p326_p3 = scmp.ne.s32.totalorder %s19_s19, %s325_s27  ;;  %p331_p5 = scmp.lt.s32.totalorder %s325_s27, %s325_s27 }
   0xc   :  { %p332_p6 = por %p331_p5, %p330_p4 }
   0xe   :  { %p333_p7 = pnand %p332_p6, %p326_p3 }
  0x10   :  { %336 = shalt.err (!%p333_p7)
}
  0x11   :  { %s388_s28 = smov 128   ;;  %s389_s29 = smov 8  }
  0x12   :  { %24 = dma.hbm_to_vmem [thread:$0]  %s476_s0, 256, %s19_s19, [#allocation4], %s388_s28, %s388_s28, %s389_s29  }
  0x13   :  { %s390_s7 = smov [#allocation6]   ;;  %s337_s11 = scalar_lea.hbm %s479_s3, 2048 }
  0x14   :  { %s34_s8 = sshll.u32 %s390_s7, 4  ;;  %p338_p8 = scmp.ne.s32.totalorder %s479_s3, %s337_s11  ;;  %s35_s8 = int_to_ptr.vmem [resolvable:$true] %s34_s8 }
  0x15   :  { %p341_p9 = scmp.lt.u32.totalorder %s337_s11, %s479_s3 }
  0x17   :  { %p343_p10 = pnand %p341_p9, %p338_p8 }
  0x19   :  { %346 = shalt.err (!%p343_p10)
}
  0x1a   :  { %s347_s16 = scalar_lea.vmem %s35_s8, 2048  ;;  %p352_p12 = scmp.lt.s32.totalorder %s35_s8, %s35_s8 }
  0x1b   :  { %p348_p11 = scmp.ne.s32.totalorder %s35_s8, %s347_s16  ;;  %p353_p13 = scmp.lt.s32.totalorder %s347_s16, %s347_s16 }
  0x1d   :  { %p354_p0 = por %p353_p13, %p352_p12 }
  0x1f   :  { %p355_p1 = pnand %p354_p0, %p348_p11 }
  0x21   :  { %358 = shalt.err (!%p355_p1)
}
  0x22   :  { %40 = dma.hbm_to_vmem [thread:$0]  %s479_s3, 2048, %s35_s8, [#allocation7], %s388_s28, %s388_s28, %s389_s29  }
  0x23   :  { %381 = dma.done.wait [#allocation4], 256  }
  0x24   :  { %382 = vsyncadd [#allocation4], 4294967040 }
  0x25   :  { %383 = dma.done.wait [#allocation7], 2048  }
  0x26   :  { %384 = vsyncadd [#allocation7], 4294965248  ;;  %v53_v0 = vld [vmem:[#allocation3] sm:$0xff]  ;;  %v54_v1 = vld [vmem:[#allocation3 + $0x8] sm:$0xff]  ;;  %s391_s23 = smov [#allocation8]  }
  0x27   :  { %55 = vadd.xlane.f32.xlu0 %v53_v0  ;;  %v100_v2 = vld [vmem:[#allocation6] sm:$0xff]  ;;  %v101_v3 = vld [vmem:[#allocation6 + $0x8] sm:$0xff]  ;;  %v102_v4 = vld [vmem:[#allocation6 + $0x10] sm:$0xff]  ;;  %s205_s24 = sshll.u32 %s391_s23, 4  ;;  %s206_s24 = int_to_ptr.vmem [resolvable:$true] %s205_s24 }
  0x28   :  { %v274_v5 = vpack.c.bf16 %v101_v3, %v100_v2  ;;  %v103_v6 = vld [vmem:[#allocation6 + $0x18] sm:$0xff]  ;;  %v104_v16 = vld [vmem:[#allocation6 + $0x20] sm:$0xff]  ;;  %v105_v17 = vld [vmem:[#allocation6 + $0x28] sm:$0xff]  ;;  %p364_p3 = scmp.lt.s32.totalorder %s206_s24, %s206_s24 }
  0x29   :  { %v278_v7 = vpack.c.bf16 %v103_v6, %v102_v4  ;;  %v282_v18 = vpack.c.bf16 %v105_v17, %v104_v16  ;;  %v106_v19 = vld [vmem:[#allocation6 + $0x30] sm:$0xff]  ;;  %v107_v20 = vld [vmem:[#allocation6 + $0x38] sm:$0xff]  ;;  %v108_v22 = vld [vmem:[#allocation6 + $0x40] sm:$0xff] }
  0x2a   :  { %275 = vmatprep.subr.bf16.mxu0 %v274_v5  ;;  %v286_v21 = vpack.c.bf16 %v107_v20, %v106_v19  ;;  %v109_v23 = vld [vmem:[#allocation6 + $0x48] sm:$0xff]  ;;  %v110_v25 = vld [vmem:[#allocation6 + $0x50] sm:$0xff]  ;;  %v111_v26 = vld [vmem:[#allocation6 + $0x58] sm:$0xff] }
  0x2b   :  { %57 = vadd.xlane.f32.xlu0 %v54_v1  ;;  %277 = vmatpush3.bf16.msra.mxu0 %v274_v5  ;;  %v290_v24 = vpack.c.bf16 %v109_v23, %v108_v22  ;;  %v112_v27 = vld [vmem:[#allocation6 + $0x60] sm:$0xff]  ;;  %v294_v28 = vpack.c.bf16 %v111_v26, %v110_v25  ;;  %v113_v29 = vld [vmem:[#allocation6 + $0x68] sm:$0xff]  ;;  %v114_v31 = vld [vmem:[#allocation6 + $0x70] sm:$0xff] }
  0x2c   :  { %279 = vmatprep.subr.bf16.mxu0 %v278_v7  ;;  %v298_v30 = vpack.c.bf16 %v113_v29, %v112_v27  ;;  %v115_v32 = vld [vmem:[#allocation6 + $0x78] sm:$0xff]  ;;  %v218_v41 = vld [vmem:[%s477_s1] ss:$0 sm:$0xff]  ;;  %s359_s1 = scalar_lea.vmem %s206_s24, 256 }
  0x2d   :  { %v302_v33 = vpack.c.bf16 %v115_v32, %v114_v31  ;;  %v219_v43 = vld [vmem:[%s478_s2] ss:$0 sm:$0xff]  ;;  %p360_p2 = scmp.ne.s32.totalorder %s206_s24, %s359_s1  ;;  %p365_p4 = scmp.lt.s32.totalorder %s359_s1, %s359_s1 }
  0x2e   :  { %v220_v50 = vld [vmem:[%s480_s4] ss:$0 sm:$0xff] }
  0x2f   :  { %281 = vmatpush3.bf16.msra.mxu0 %v278_v7  ;;  %p366_p5 = por %p365_p4, %p364_p3 }
  0x30   :  { %283 = vmatprep.subr.bf16.mxu0 %v282_v18 }
  0x31   :  { %p367_p6 = pnand %p366_p5, %p360_p2 }
  0x33   :  { %285 = vmatpush3.bf16.msra.mxu0 %v282_v18 }
  0x34   :  { %287 = vmatprep.subr.bf16.mxu0 %v286_v21 }
  0x37   :  { %289 = vmatpush3.bf16.msra.mxu0 %v286_v21 }
  0x38   :  { %291 = vmatprep.subr.bf16.mxu0 %v290_v24 }
  0x3b   :  { %293 = vmatpush3.bf16.msra.mxu0 %v290_v24 }
  0x3c   :  { %295 = vmatprep.subr.bf16.mxu0 %v294_v28 }
  0x3f   :  { %297 = vmatpush3.bf16.msra.mxu0 %v294_v28 }
  0x40   :  { %299 = vmatprep.subr.bf16.mxu0 %v298_v30 }
  0x43   :  { %301 = vmatpush3.bf16.msra.mxu0 %v298_v30 }
  0x44   :  { %303 = vmatprep.subr.bf16.mxu0 %v302_v33 }
  0x47   :  { %305 = vmatpush3.bf16.msra.mxu0 %v302_v33 }
  0xb4   :  { %v56_v8 = vpop.xlane.xlu0 %55 }
  0xb5   :  { %v60_v9 = vmul.f32 0.0078125, %v56_v8 }
  0xb7   :  { %v62_v10 = vsub.f32 %v53_v0, %v60_v9 }
  0xb8   :  { %v58_v11 = vpop.xlane.xlu0 %57 }
  0xb9   :  { %v61_v12 = vmul.f32 0.0078125, %v58_v11  ;;  %v64_v13 = vmul.f32 %v62_v10, %v62_v10 }
  0xbb   :  { %v63_v14 = vsub.f32 %v54_v1, %v61_v12  ;;  %66 = vadd.xlane.f32.xlu1 %v64_v13 }
  0xbd   :  { %v65_v15 = vmul.f32 %v63_v14, %v63_v14 }
  0xbf   :  { %68 = vadd.xlane.f32.xlu1 %v65_v15 }
 0x148   :  { %v67_v34 = vpop.xlane.xlu1 %66 }
 0x149   :  { %v70_v35 = vmul.f32 0.0078125, %v67_v34 }
 0x14b   :  { %v72_v36 = vadd.f32 1e-05, %v70_v35 }
 0x14c   :  { %v69_v37 = vpop.xlane.xlu1 %68 }
 0x14d   :  { %311 = vrsqrt.f32 %v72_v36  ;;  %v71_v38 = vmul.f32 0.0078125, %v69_v37 }
 0x14f   :  { %v73_v39 = vadd.f32 1e-05, %v71_v38 }
 0x151   :  { %313 = vrsqrt.f32 %v73_v39 }
 0x157   :  { %v312_v40 = vpop.eup %311 }
 0x158   :  { %v76_v42 = vmul.f32 %v312_v40, %v62_v10 }
 0x15a   :  { %v85_v44 = vmul.f32 %v218_v41, %v76_v42 }
 0x15b   :  { %v314_v45 = vpop.eup %313 }
 0x15c   :  { %v77_v46 = vmul.f32 %v314_v45, %v63_v14  ;;  %v94_v47 = vadd.f32 %v219_v43, %v85_v44 }
 0x15e   :  { %v86_v48 = vmul.f32 %v218_v41, %v77_v46  ;;  %271 = vmatprep.mubr.f32.mxu0 %v94_v47 }
 0x160   :  { %v95_v49 = vadd.f32 %v219_v43, %v86_v48 }
 0x162   :  { %272 = vmatmul.mubr.f32.vlgmr.msra.gmra.mrb[0].mxu0 %v95_v49 }
 0x235   :  { %v273_v51 = vpop.f32.mrb[0].mxu0 }
 0x236   :  { %v195_v52 = vadd.f32 %v273_v51, %v220_v50  ;;  %v189_v53 = vpop.f32.mrb[1].mxu0 }
 0x237   :  { %v190_v54 = vadd.f32 %v220_v50, %v189_v53 }
 0x238   :  { %199 = vst [vmem:[#allocation8 + $0x8] sm:$0xff] %v195_v52 }
 0x239   :  { %198 = vst [vmem:[#allocation8] sm:$0xff] %v190_v54 }
 0x23a   :  { %370 = shalt.err (!%p367_p6)
}
 0x23b   :  { %s371_s4 = scalar_lea.hbm %s481_s5, 256 }
 0x23c   :  { %p372_p7 = scmp.ne.s32.totalorder %s481_s5, %s371_s4  ;;  %p375_p8 = scmp.lt.u32.totalorder %s371_s4, %s481_s5 }
 0x23e   :  { %p377_p9 = pnand %p375_p8, %p372_p7 }
 0x240   :  { %380 = shalt.err (!%p377_p9)
}
 0x241   :  { %211 = dma.vmem_to_hbm [thread:$0]  %s206_s24, 256, %s481_s5, [#allocation5], %s388_s28, %s388_s28, %s389_s29  }
 0x242   :  { %385 = dma.done.wait [#allocation5], 256  }
 0x243   :  { %386 = vsyncadd [#allocation5], 4294967040 }
 0x244   :  { %215 = vsyncpa [#allocation4], 1 }
 0x245   :  { %216 = vsyncpa [#allocation7], 1 }
 0x246   :  { %217 = vsyncpa [#allocation5], 1 }

</bundles_post_ra>
